<compile_context>
chip_gen: v6e
topology: v6e:2x2x1
jax: 0.10.0
libtpu: 0.0.40
codegen_flags: <defaults>
</compile_context>

<pallas_src>
import jax
import jax.numpy as jnp
from jax.experimental import pallas as pl
from jax.experimental.pallas import tpu as pltpu


# --------------------------- generation handling --------------------------- #

def _tpu_generation():
    try:
        kind = jax.devices()[0].device_kind.lower()
    except Exception:
        return "unknown"
    if "v5" in kind:
        return "v5"
    if "v6" in kind:
        return "v6"
    if "v7" in kind or "7x" in kind:
        return "v7"
    return "unknown"


# ------------------------------ Pallas kernel ------------------------------ #

def _make_mlp_kernel(epi_dtype):
    """Fused (x @ W1 + b1) -> GELU -> (@ W2) accumulate -> (+ b2) kernel.

    Grid is (row_tiles, F_chunks); the f32 accumulator lives in VMEM scratch,
    so the full hidden activation never exists at once nor touches HBM.
    """
    def kernel(x_ref, w1_ref, b1_ref, w2_ref, b2_ref, o_ref, acc_ref):
        f = pl.program_id(1)

        @pl.when(f == 0)
        def _():
            acc_ref[...] = jnp.zeros_like(acc_ref)

        # Linear 1 chunk: (tile_m, E) @ (E, tile_f).  Cast x to bf16 in-VMEM;
        # the cast hides under the MXU instead of being a separate HBM pass.
        x = x_ref[...].astype(jnp.bfloat16)
        h = jnp.dot(x, w1_ref[...], preferred_element_type=jnp.float32)
        h = h + b1_ref[...]                      # f32 bias add

        # GELU (tanh form).  epi_dtype is bf16 on v6e/v7x (bf16 VPU/EUP), f32
        # on v5e.  PyTorch nn.GELU() default is exact erf; tanh form deviates
        # by <~1e-3 absolute.
        h = h.astype(epi_dtype)
        g = 0.5 * h * (1.0 + jnp.tanh(0.7978845608028654
                                      * (h + 0.044715 * (h * h * h))))

        # TODO(synk): training-mode Dropout(0.1) (pltpu.prng_seed /
        # pltpu.prng_random_bits) not implemented; eval-mode dropout = identity.

        # Linear 2 chunk: accumulate (tile_m, tile_f) @ (tile_f, E) in f32.
        acc_ref[...] += jnp.dot(g.astype(jnp.bfloat16), w2_ref[...],
                                preferred_element_type=jnp.float32)

        @pl.when(f == pl.num_programs(1) - 1)
        def _():
            # TODO(synk): emit bf16 output if the downstream consumer is bf16.
            o_ref[...] = (acc_ref[...] + b2_ref[...]).astype(o_ref.dtype)

    return kernel


# ----------------------------- tiling helpers ------------------------------ #

def _choose_tile_m(M):
    # Prefer a divisor of M (no pad) that gives >= 2 grid steps so both v7x
    # TensorCores get work and the row tiles pipeline.
    for t in (512, 256, 128, 64, 32, 16, 8):
        if M % t == 0 and M // t >= 2:
            return t
    if M <= 512:
        return max(8, -(-M // 8) * 8)     # single (possibly padded) tile
    return 512                            # large ragged M: pad the tail


def _choose_tile_f(F):
    if F <= 1536:
        return F                          # single chunk, weights stay resident
    for t in (1024, 768, 512, 384, 256, 128):
        if F % t == 0:                    # halving a divisor stays a divisor
            return t
    return F


def _vmem_bytes(tile_m, tile_f, E, grid_f, single_buf_w):
    nbuf_w = 1 if (grid_f == 1 and single_buf_w) else 2
    return (2 * tile_m * E * 4            # x row tiles (f32, double buffered)
            + 2 * tile_m * E * 4          # out tiles
            + tile_m * E * 4              # f32 accumulator scratch
            + nbuf_w * 2 * E * tile_f * 2  # W1 + W2 chunks (bf16)
            + 2 * tile_f * 4 + 2 * E * 4  # biases
            + 2 * tile_m * tile_f * 4)    # live hidden-chunk headroom


# ------------------------------- Wrapper ----------------------------------- #

def mlp_forward(x, params):
    """x: (..., E) float32.  Returns (..., E) in x.dtype (eval-mode forward)."""
    *lead, E = x.shape
    F = params["w1"].shape[1]
    gen = _tpu_generation()

    x2 = x.reshape(-1, E).astype(jnp.float32)
    M = x2.shape[0]

    tile_m = _choose_tile_m(M)
    tile_f = _choose_tile_f(F)

    # Generation-aware VMEM budget.
    cap = {"v5": 100 << 20, "v6": 100 << 20, "v7": 56 << 20}.get(gen, 48 << 20)
    while (_vmem_bytes(tile_m, tile_f, E, pl.cdiv(F, tile_f), True) > cap
           and tile_m > 256):
        tile_m = max(256, tile_m // 2)
    while (_vmem_bytes(tile_m, tile_f, E, pl.cdiv(F, tile_f), True) > cap
           and tile_f % 256 == 0 and tile_f > 256):
        tile_f //= 2

    grid_m = pl.cdiv(M, tile_m)
    grid_f = pl.cdiv(F, tile_f)
    Mp = grid_m * tile_m
    if Mp != M:
        x2 = jnp.pad(x2, ((0, Mp - M), (0, 0)))

    # bf16 MXU weights; f32 biases / accumulation.
    w1 = params["w1"].astype(jnp.bfloat16)
    w2 = params["w2"].astype(jnp.bfloat16)
    b1 = params["b1"].reshape(1, F).astype(jnp.float32)
    b2 = params["b2"].reshape(1, E).astype(jnp.float32)

    epi_dtype = jnp.bfloat16 if gen in ("v6", "v7") else jnp.float32
    kernel = _make_mlp_kernel(epi_dtype)

    cost = pl.CostEstimate(
        flops=4 * Mp * E * F,                       # two matmuls
        transcendentals=Mp * F,                     # one tanh per hidden unit
        bytes_accessed=(Mp * E * 4                  # x read (f32)
                        + Mp * E * 4                # out write (f32)
                        + grid_m * 2 * E * F * 2    # streamed bf16 weights
                        + (F + E) * 4),             # biases
    )
    vmem_limit = int(min(cap,
                         max(2 * _vmem_bytes(tile_m, tile_f, E, grid_f, True),
                             16 << 20)))
    cparams = pltpu.CompilerParams(
        dimension_semantics=("parallel", "arbitrary"),
        vmem_limit_bytes=vmem_limit,
    )

    def build(use_buffered):
        def w_spec(shape, imap, resident):
            if use_buffered and resident:
                # Constant-index block: single buffer (double-buffering a
                # block that never changes just doubles its VMEM footprint).
                return pl.BlockSpec(shape, imap, pipeline_mode=pl.Buffered(1))
            return pl.BlockSpec(shape, imap)

        resident_w = (grid_f == 1)   # one F-chunk => W1/W2/b1 never change
        in_specs = [
            pl.BlockSpec((tile_m, E), lambda i, f: (i, 0)),          # x tile
            w_spec((E, tile_f), lambda i, f: (0, f), resident_w),    # W1 chunk
            w_spec((1, tile_f), lambda i, f: (0, f), resident_w),    # b1 chunk
            w_spec((tile_f, E), lambda i, f: (f, 0), resident_w),    # W2 chunk
            w_spec((1, E), lambda i, f: (0, 0), True),               # b2
        ]
        return pl.pallas_call(
            kernel,
            out_shape=jax.ShapeDtypeStruct((Mp, E), x.dtype),
            grid_spec=pltpu.PrefetchScalarGridSpec(
                num_scalar_prefetch=0,
                grid=(grid_m, grid_f),
                in_specs=in_specs,
                out_specs=pl.BlockSpec((tile_m, E), lambda i, f: (i, 0)),
                scratch_shapes=[pltpu.VMEM((tile_m, E), jnp.float32)],
            ),
            compiler_params=cparams,
            cost_estimate=cost,
        )

    try:
        out = build(True)(x2, w1, b1, w2, b2)
    except Exception:
        # pipeline_mode / pl.Buffered(1) unsupported in this build: fall back
        # to default double-buffered specs (correct, slightly more VMEM).
        out = build(False)(x2, w1, b1, w2, b2)

    return out[:M].reshape(*lead, E)


# ------------------------------ Params & ref -------------------------------- #

def init_params(key, embedding_dim, mlp_dim):
    """PyTorch nn.Linear-style init (uniform +/- 1/sqrt(fan_in))."""
    k1, k2, k3, k4 = jax.random.split(key, 4)
    s1 = float(1.0 / (embedding_dim ** 0.5))
    s2 = float(1.0 / (mlp_dim ** 0.5))
    return {
        "w1": jax.random.uniform(k1, (embedding_dim, mlp_dim), jnp.float32, -s1, s1),
        "b1": jax.random.uniform(k2, (mlp_dim,), jnp.float32, -s1, s1),
        "w2": jax.random.uniform(k3, (mlp_dim, embedding_dim), jnp.float32, -s2, s2),
        "b2": jax.random.uniform(k4, (embedding_dim,), jnp.float32, -s2, s2),
    }


def reference_forward(x, params):
    """Pure-JAX eval-mode reference (exact erf GELU, matching PyTorch nn.GELU)."""
    h = x @ params["w1"] + params["b1"]
    h = jax.nn.gelu(h, approximate=False)
    return h @ params["w2"] + params["b2"]


# ----------------------------------- main ----------------------------------- #

if __name__ == "__main__":
    key = jax.random.PRNGKey(0)
    k_x, k_p = jax.random.split(key)

    B, T, E, FDIM = 2, 8, 32, 64          # batch, seq, embedding_dim, mlp_dim
    x = jax.random.normal(k_x, (B, T, E), jnp.float32)
    params = init_params(k_p, E, FDIM)

    out = jax.block_until_ready(mlp_forward(x, params))
    ref = jax.block_until_ready(reference_forward(x, params))

    assert out.shape == (B, T, E), out.shape
    assert bool(jnp.all(jnp.isfinite(out)))
    max_err = float(jnp.max(jnp.abs(out - ref)))
    assert jnp.allclose(out, ref, rtol=2e-2, atol=2e-2), max_err

    print("KERNEL_OK")
</pallas_src>

<mosaic_0001>
module attributes {stable_mosaic.version = 11 : i64} {
  func.func @kernel(%arg0: i32, %arg1: i32, %arg2: memref<8x32xf32, #tpu.memory_space<vmem>>, %arg3: memref<32x64xbf16, #tpu.memory_space<vmem>>, %arg4: memref<1x64xf32, #tpu.memory_space<vmem>>, %arg5: memref<64x32xbf16, #tpu.memory_space<vmem>>, %arg6: memref<1x32xf32, #tpu.memory_space<vmem>>, %arg7: memref<8x32xf32, #tpu.memory_space<vmem>>, %arg8: memref<8x32xf32, #tpu.memory_space<vmem>>) attributes {dimension_semantics = [#tpu.dimension_semantics<parallel>, #tpu.dimension_semantics<arbitrary>], iteration_bounds = array<i64: 2, 1>, scalar_prefetch = 0 : i64, scratch_operands = 1 : i64, tpu.core_type = #tpu.core_type<tc>, window_params = [{transform_indices = @transform_0, window_bounds = array<i64: 8, 32>}, {pipeline_mode = #tpu.pipeline_mode<synchronous>, transform_indices = @transform_1, window_bounds = array<i64: 32, 64>}, {pipeline_mode = #tpu.pipeline_mode<synchronous>, transform_indices = @transform_2, window_bounds = array<i64: 1, 64>}, {pipeline_mode = #tpu.pipeline_mode<synchronous>, transform_indices = @transform_3, window_bounds = array<i64: 64, 32>}, {pipeline_mode = #tpu.pipeline_mode<synchronous>, transform_indices = @transform_4, window_bounds = array<i64: 1, 32>}, {transform_indices = @transform_5, window_bounds = array<i64: 8, 32>}]} {
    %c0_i32 = arith.constant 0 : i32
    %0 = arith.cmpi eq, %arg1, %c0_i32 : i32
    %1 = arith.extui %0 : i1 to i32
    %c0_i32_0 = arith.constant 0 : i32
    %2 = arith.cmpi ne, %1, %c0_i32_0 : i32
    scf.if %2 {
      %cst_19 = arith.constant 0.000000e+00 : f32
      %32 = vector.broadcast %cst_19 : f32 to vector<8x32xf32>
      %c0_20 = arith.constant 0 : index
      %c0_21 = arith.constant 0 : index
      %33 = vector.load %arg8[%c0_20, %c0_21] : memref<8x32xf32, #tpu.memory_space<vmem>>, vector<8x32xf32>
      tpu.vector_store %arg8[%c0_20, %c0_21], %32 {strides = array<i32>} : memref<8x32xf32, #tpu.memory_space<vmem>>, vector<8x32xf32>,
    } else {
    }
    %c0 = arith.constant 0 : index
    %c0_1 = arith.constant 0 : index
    %3 = vector.load %arg2[%c0, %c0_1] : memref<8x32xf32, #tpu.memory_space<vmem>>, vector<8x32xf32>
    %4 = arith.truncf %3 : vector<8x32xf32> to vector<8x32xbf16>
    %c0_2 = arith.constant 0 : index
    %c0_3 = arith.constant 0 : index
    %5 = vector.load %arg3[%c0_2, %c0_3] : memref<32x64xbf16, #tpu.memory_space<vmem>>, vector<32x64xbf16>
    %cst = arith.constant dense<0.000000e+00> : vector<8x64xf32>
    %6 = tpu.matmul %4, %5, %cst {dimension_numbers = #tpu.dot_dimension_numbers<[1], [0], [0], [1], [0, 0, 1, 1], [], []>} : vector<8x32xbf16>, vector<32x64xbf16>, vector<8x64xf32> -> vector<8x64xf32>
    %c0_4 = arith.constant 0 : index
    %c0_5 = arith.constant 0 : index
    %7 = vector.load %arg4[%c0_4, %c0_5] : memref<1x64xf32, #tpu.memory_space<vmem>>, vector<1x64xf32>
    %8 = vector.broadcast %7 : vector<1x64xf32> to vector<8x64xf32>
    %9 = arith.addf %6, %8 : vector<8x64xf32>
    %cst_6 = arith.constant 5.000000e-01 : f32
    %10 = vector.broadcast %cst_6 : f32 to vector<8x64xf32>
    %11 = arith.mulf %10, %9 : vector<8x64xf32>
    %12 = arith.mulf %9, %9 : vector<8x64xf32>
    %13 = arith.mulf %12, %9 : vector<8x64xf32>
    %cst_7 = arith.constant 4.471500e-02 : f32
    %14 = vector.broadcast %cst_7 : f32 to vector<8x64xf32>
    %15 = arith.mulf %14, %13 : vector<8x64xf32>
    %16 = arith.addf %9, %15 : vector<8x64xf32>
    %cst_8 = arith.constant 0.797884583 : f32
    %17 = vector.broadcast %cst_8 : f32 to vector<8x64xf32>
    %18 = arith.mulf %17, %16 : vector<8x64xf32>
    %19 = math.tanh %18 : vector<8x64xf32>
    %cst_9 = arith.constant 1.000000e+00 : f32
    %20 = vector.broadcast %cst_9 : f32 to vector<8x64xf32>
    %21 = arith.addf %20, %19 : vector<8x64xf32>
    %22 = arith.mulf %11, %21 : vector<8x64xf32>
    %c0_10 = arith.constant 0 : index
    %c0_11 = arith.constant 0 : index
    %23 = vector.load %arg8[%c0_10, %c0_11] : memref<8x32xf32, #tpu.memory_space<vmem>>, vector<8x32xf32>
    %24 = arith.truncf %22 : vector<8x64xf32> to vector<8x64xbf16>
    %c0_12 = arith.constant 0 : index
    %c0_13 = arith.constant 0 : index
    %25 = vector.load %arg5[%c0_12, %c0_13] : memref<64x32xbf16, #tpu.memory_space<vmem>>, vector<64x32xbf16>
    %cst_14 = arith.constant dense<0.000000e+00> : vector<8x32xf32>
    %26 = tpu.matmul %24, %25, %cst_14 {dimension_numbers = #tpu.dot_dimension_numbers<[1], [0], [0], [1], [0, 0, 1, 1], [], []>} : vector<8x64xbf16>, vector<64x32xbf16>, vector<8x32xf32> -> vector<8x32xf32>
    %27 = arith.addf %23, %26 : vector<8x32xf32>
    %c0_15 = arith.constant 0 : index
    %c0_16 = arith.constant 0 : index
    %28 = vector.load %arg8[%c0_15, %c0_16] : memref<8x32xf32, #tpu.memory_space<vmem>>, vector<8x32xf32>
    tpu.vector_store %arg8[%c0_15, %c0_16], %27 {strides = array<i32>} : memref<8x32xf32, #tpu.memory_space<vmem>>, vector<8x32xf32>,
    %c0_i32_17 = arith.constant 0 : i32
    %29 = arith.cmpi eq, %arg1, %c0_i32_17 : i32
    %30 = arith.extui %29 : i1 to i32
    %c0_i32_18 = arith.constant 0 : i32
    %31 = arith.cmpi ne, %30, %c0_i32_18 : i32
    scf.if %31 {
      %c0_19 = arith.constant 0 : index
      %c0_20 = arith.constant 0 : index
      %32 = vector.load %arg8[%c0_19, %c0_20] : memref<8x32xf32, #tpu.memory_space<vmem>>, vector<8x32xf32>
      %c0_21 = arith.constant 0 : index
      %c0_22 = arith.constant 0 : index
      %33 = vector.load %arg6[%c0_21, %c0_22] : memref<1x32xf32, #tpu.memory_space<vmem>>, vector<1x32xf32>
      %34 = vector.broadcast %33 : vector<1x32xf32> to vector<8x32xf32>
      %35 = arith.addf %32, %34 : vector<8x32xf32>
      %c0_23 = arith.constant 0 : index
      %c0_24 = arith.constant 0 : index
      %36 = vector.load %arg7[%c0_23, %c0_24] : memref<8x32xf32, #tpu.memory_space<vmem>>, vector<8x32xf32>
      tpu.vector_store %arg7[%c0_23, %c0_24], %35 {strides = array<i32>} : memref<8x32xf32, #tpu.memory_space<vmem>>, vector<8x32xf32>,
    } else {
    }
    return
  }
  func.func @transform_0(%arg0: i32, %arg1: i32) -> (i32, i32) {
    %c0_i32 = arith.constant 0 : i32
    %c0_i32_0 = arith.constant 0 : i32
    return %arg0, %c0_i32 : i32, i32
  }
  func.func @transform_1(%arg0: i32, %arg1: i32) -> (i32, i32) {
    %c0_i32 = arith.constant 0 : i32
    %c0_i32_0 = arith.constant 0 : i32
    return %c0_i32, %arg1 : i32, i32
  }
  func.func @transform_2(%arg0: i32, %arg1: i32) -> (i32, i32) {
    %c0_i32 = arith.constant 0 : i32
    %c0_i32_0 = arith.constant 0 : i32
    return %c0_i32, %arg1 : i32, i32
  }
  func.func @transform_3(%arg0: i32, %arg1: i32) -> (i32, i32) {
    %c0_i32 = arith.constant 0 : i32
    %c0_i32_0 = arith.constant 0 : i32
    return %arg1, %c0_i32 : i32, i32
  }
  func.func @transform_4(%arg0: i32, %arg1: i32) -> (i32, i32) {
    %c0_i32 = arith.constant 0 : i32
    %c0_i32_0 = arith.constant 0 : i32
    %c0_i32_1 = arith.constant 0 : i32
    return %c0_i32, %c0_i32_0 : i32, i32
  }
  func.func @transform_5(%arg0: i32, %arg1: i32) -> (i32, i32) {
    %c0_i32 = arith.constant 0 : i32
    %c0_i32_0 = arith.constant 0 : i32
    return %arg0, %c0_i32 : i32, i32
  }
}

module attributes {stable_mosaic.version = 11 : i64} {
  func.func @kernel(%arg0: i32, %arg1: i32, %arg2: memref<8x32xf32, #tpu.memory_space<vmem>>, %arg3: memref<32x64xbf16, #tpu.memory_space<vmem>>, %arg4: memref<1x64xf32, #tpu.memory_space<vmem>>, %arg5: memref<64x32xbf16, #tpu.memory_space<vmem>>, %arg6: memref<1x32xf32, #tpu.memory_space<vmem>>, %arg7: memref<8x32xf32, #tpu.memory_space<vmem>>, %arg8: memref<8x32xf32, #tpu.memory_space<vmem>>) attributes {dimension_semantics = [#tpu.dimension_semantics<parallel>, #tpu.dimension_semantics<arbitrary>], iteration_bounds = array<i64: 2, 1>, scalar_prefetch = 0 : i64, scratch_operands = 1 : i64, tpu.core_type = #tpu.core_type<tc>, window_params = [{transform_indices = @transform_0, window_bounds = array<i64: 8, 32>}, {transform_indices = @transform_1, window_bounds = array<i64: 32, 64>}, {transform_indices = @transform_2, window_bounds = array<i64: 1, 64>}, {transform_indices = @transform_3, window_bounds = array<i64: 64, 32>}, {pipeline_mode = #tpu.pipeline_mode<synchronous>, transform_indices = @transform_4, window_bounds = array<i64: 1, 32>}, {transform_indices = @transform_5, window_bounds = array<i64: 8, 32>}]} {
    %c0_i32 = arith.constant 0 : i32
    %0 = arith.cmpi eq, %arg1, %c0_i32 : i32
    %1 = arith.extui %0 : i1 to i32
    %c0_i32_0 = arith.constant 0 : i32
    %2 = arith.cmpi ne, %1, %c0_i32_0 : i32
    scf.if %2 {
      %cst_19 = arith.constant 0.000000e+00 : f32
      %32 = vector.broadcast %cst_19 : f32 to vector<8x32xf32>
      %c0_20 = arith.constant 0 : index
      %c0_21 = arith.constant 0 : index
      %33 = vector.load %arg8[%c0_20, %c0_21] : memref<8x32xf32, #tpu.memory_space<vmem>>, vector<8x32xf32>
      tpu.vector_store %arg8[%c0_20, %c0_21], %32 {strides = array<i32>} : memref<8x32xf32, #tpu.memory_space<vmem>>, vector<8x32xf32>,
    } else {
    }
    %c0 = arith.constant 0 : index
    %c0_1 = arith.constant 0 : index
    %3 = vector.load %arg2[%c0, %c0_1] : memref<8x32xf32, #tpu.memory_space<vmem>>, vector<8x32xf32>
    %4 = arith.truncf %3 : vector<8x32xf32> to vector<8x32xbf16>
    %c0_2 = arith.constant 0 : index
    %c0_3 = arith.constant 0 : index
    %5 = vector.load %arg3[%c0_2, %c0_3] : memref<32x64xbf16, #tpu.memory_space<vmem>>, vector<32x64xbf16>
    %cst = arith.constant dense<0.000000e+00> : vector<8x64xf32>
    %6 = tpu.matmul %4, %5, %cst {dimension_numbers = #tpu.dot_dimension_numbers<[1], [0], [0], [1], [0, 0, 1, 1], [], []>} : vector<8x32xbf16>, vector<32x64xbf16>, vector<8x64xf32> -> vector<8x64xf32>
    %c0_4 = arith.constant 0 : index
    %c0_5 = arith.constant 0 : index
    %7 = vector.load %arg4[%c0_4, %c0_5] : memref<1x64xf32, #tpu.memory_space<vmem>>, vector<1x64xf32>
    %8 = vector.broadcast %7 : vector<1x64xf32> to vector<8x64xf32>
    %9 = arith.addf %6, %8 : vector<8x64xf32>
    %cst_6 = arith.constant 5.000000e-01 : f32
    %10 = vector.broadcast %cst_6 : f32 to vector<8x64xf32>
    %11 = arith.mulf %10, %9 : vector<8x64xf32>
    %12 = arith.mulf %9, %9 : vector<8x64xf32>
    %13 = arith.mulf %12, %9 : vector<8x64xf32>
    %cst_7 = arith.constant 4.471500e-02 : f32
    %14 = vector.broadcast %cst_7 : f32 to vector<8x64xf32>
    %15 = arith.mulf %14, %13 : vector<8x64xf32>
    %16 = arith.addf %9, %15 : vector<8x64xf32>
    %cst_8 = arith.constant 0.797884583 : f32
    %17 = vector.broadcast %cst_8 : f32 to vector<8x64xf32>
    %18 = arith.mulf %17, %16 : vector<8x64xf32>
    %19 = math.tanh %18 : vector<8x64xf32>
    %cst_9 = arith.constant 1.000000e+00 : f32
    %20 = vector.broadcast %cst_9 : f32 to vector<8x64xf32>
    %21 = arith.addf %20, %19 : vector<8x64xf32>
    %22 = arith.mulf %11, %21 : vector<8x64xf32>
    %c0_10 = arith.constant 0 : index
    %c0_11 = arith.constant 0 : index
    %23 = vector.load %arg8[%c0_10, %c0_11] : memref<8x32xf32, #tpu.memory_space<vmem>>, vector<8x32xf32>
    %24 = arith.truncf %22 : vector<8x64xf32> to vector<8x64xbf16>
    %c0_12 = arith.constant 0 : index
    %c0_13 = arith.constant 0 : index
    %25 = vector.load %arg5[%c0_12, %c0_13] : memref<64x32xbf16, #tpu.memory_space<vmem>>, vector<64x32xbf16>
    %cst_14 = arith.constant dense<0.000000e+00> : vector<8x32xf32>
    %26 = tpu.matmul %24, %25, %cst_14 {dimension_numbers = #tpu.dot_dimension_numbers<[1], [0], [0], [1], [0, 0, 1, 1], [], []>} : vector<8x64xbf16>, vector<64x32xbf16>, vector<8x32xf32> -> vector<8x32xf32>
    %27 = arith.addf %23, %26 : vector<8x32xf32>
    %c0_15 = arith.constant 0 : index
    %c0_16 = arith.constant 0 : index
    %28 = vector.load %arg8[%c0_15, %c0_16] : memref<8x32xf32, #tpu.memory_space<vmem>>, vector<8x32xf32>
    tpu.vector_store %arg8[%c0_15, %c0_16], %27 {strides = array<i32>} : memref<8x32xf32, #tpu.memory_space<vmem>>, vector<8x32xf32>,
    %c0_i32_17 = arith.constant 0 : i32
    %29 = arith.cmpi eq, %arg1, %c0_i32_17 : i32
    %30 = arith.extui %29 : i1 to i32
    %c0_i32_18 = arith.constant 0 : i32
    %31 = arith.cmpi ne, %30, %c0_i32_18 : i32
    scf.if %31 {
      %c0_19 = arith.constant 0 : index
      %c0_20 = arith.constant 0 : index
      %32 = vector.load %arg8[%c0_19, %c0_20] : memref<8x32xf32, #tpu.memory_space<vmem>>, vector<8x32xf32>
      %c0_21 = arith.constant 0 : index
      %c0_22 = arith.constant 0 : index
      %33 = vector.load %arg6[%c0_21, %c0_22] : memref<1x32xf32, #tpu.memory_space<vmem>>, vector<1x32xf32>
      %34 = vector.broadcast %33 : vector<1x32xf32> to vector<8x32xf32>
      %35 = arith.addf %32, %34 : vector<8x32xf32>
      %c0_23 = arith.constant 0 : index
      %c0_24 = arith.constant 0 : index
      %36 = vector.load %arg7[%c0_23, %c0_24] : memref<8x32xf32, #tpu.memory_space<vmem>>, vector<8x32xf32>
      tpu.vector_store %arg7[%c0_23, %c0_24], %35 {strides = array<i32>} : memref<8x32xf32, #tpu.memory_space<vmem>>, vector<8x32xf32>,
    } else {
    }
    return
  }
  func.func @transform_0(%arg0: i32, %arg1: i32) -> (i32, i32) {
    %c0_i32 = arith.constant 0 : i32
    %c0_i32_0 = arith.constant 0 : i32
    return %arg0, %c0_i32 : i32, i32
  }
  func.func @transform_1(%arg0: i32, %arg1: i32) -> (i32, i32) {
    %c0_i32 = arith.constant 0 : i32
    %c0_i32_0 = arith.constant 0 : i32
    return %c0_i32, %arg1 : i32, i32
  }
  func.func @transform_2(%arg0: i32, %arg1: i32) -> (i32, i32) {
    %c0_i32 = arith.constant 0 : i32
    %c0_i32_0 = arith.constant 0 : i32
    return %c0_i32, %arg1 : i32, i32
  }
  func.func @transform_3(%arg0: i32, %arg1: i32) -> (i32, i32) {
    %c0_i32 = arith.constant 0 : i32
    %c0_i32_0 = arith.constant 0 : i32
    return %arg1, %c0_i32 : i32, i32
  }
  func.func @transform_4(%arg0: i32, %arg1: i32) -> (i32, i32) {
    %c0_i32 = arith.constant 0 : i32
    %c0_i32_0 = arith.constant 0 : i32
    %c0_i32_1 = arith.constant 0 : i32
    return %c0_i32, %c0_i32_0 : i32, i32
  }
  func.func @transform_5(%arg0: i32, %arg1: i32) -> (i32, i32) {
    %c0_i32 = arith.constant 0 : i32
    %c0_i32_0 = arith.constant 0 : i32
    return %arg0, %c0_i32 : i32, i32
  }
}

</mosaic_0001>

<bundles_post_ra>
// kernel: tpu_custom_call.1
= control target key start
LH: loop header
LB: loop body
LE: loop exit
PB: predicated region body
PF: predicated region fallthrough
CT: control target
= control target key end

     0   :  { %10 = vsyncpa [#allocation4], 0  ;;  %s941_s0 = inlined_call_operand.vmem [shape: f32[16,32], index: 0, kind: input, shape index: {}]   ;;  %s942_s1 = inlined_call_operand.vmem [shape: bf16[32,64], index: 1, kind: input, shape index: {}]   ;;  %s943_s2 = inlined_call_operand.vmem [shape: f32[1,64], index: 2, kind: input, shape index: {}]   ;;  %s944_s3 = inlined_call_operand.vmem [shape: bf16[64,32], index: 3, kind: input, shape index: {}]   ;;  %s945_s4 = inlined_call_operand.vmem [shape: f32[1,32], index: 4, kind: input, shape index: {}]   ;;  %s946_s5 = inlined_call_operand.hbm [shape: f32[16,32], index: 5, kind: output, shape index: {}]  }
   0x1   :  { %12 = vsyncpa [#allocation4 + $0x1], 0  ;;  %s814_s18 = smov 0   ;;  %s816_s19 = smov 0  }
   0x2   :  { %s818_s20 = smov 0   ;;  %s820_s21 = smov 0  }
   0x3   :  { %s822_s22 = smov 0   ;;  %s824_s23 = smov 0  }
   0x4 LB: > { %s586_s24 = sadd.s32 4294967295, %s779_s23   ;;  %s587_s25 = sadd.s32 4294967294, %s779_s23   ;;  %s779_s23 = sphi %s824_s23, %s18_s23   ;;  %s775_s22 = sphi %s822_s22, %s953_s22   ;;  %s771_s21 = sphi %s820_s21, %s952_s21   ;;  %s767_s20 = sphi %s818_s20, %s951_s20   ;;  %s763_s19 = sphi %s816_s19, %s950_s19   ;;  %s759_s18 = sphi %s814_s18, %s949_s18  }
   0x5   : > { %s30_s26 = sadd.s32 1, %s775_s22  ;;  %s162_s27 = sadd.s32 1, %s767_s20 }
   0x6   : > { %p32_p0 = scmp.ge.s32.totalorder %s30_s26, 2  ;;  %p172_p1 = scmp.ne.s32.totalorder %s767_s20, %s763_s19 }
   0x7   : > { %p173_p2 = scmp.eq.s32.totalorder %s586_s24, 1  ;;  %p178_p3 = scmp.ne.s32.totalorder %s763_s19, %s759_s18 }
   0x8   : > { %s955_s26 = smov (%p32_p0, %s30_s26), 0  ;;  %p179_p5 = scmp.eq.s32.totalorder %s587_s25, 1 }
   0x9   : > { %p854_p4 = por %p173_p2, %p172_p1  ;;  %s159_s29 = ssub.s32 %s775_s22, %s955_s26 }
   0xa   : > { %p593_p6 = scmp.ge.s32.totalorder %s779_s23, 1  ;;  %p160_p7 = scmp.eq.s32.totalorder %s159_s29, 0 }
   0xb   : > { %p861_p8 = por %p179_p5, %p178_p3  ;;  %p229_p9 = scmp.lt.s32.totalorder %s779_s23, 3 }
   0xc   : > { %s867_s6 = scalar_select %p160_p7, %s767_s20, %s162_s27  }
   0xd   : > { %p230_p10 = pnand %p593_p6, %p229_p9 }
   0xe   : > { %p268_p11 = scmp.lt.s32.totalorder (!%p230_p10), %s771_s21, 1  ;;  %s783_s8 = smov (!%p230_p10), [#allocation3]  }
   0xf   : > { %233 = sbr.rel (%p230_p10) target bundleno = 472 (0x1d8), region = 40  ;;  %s707_s9 = sshll.u32 (!%p230_p10), %s783_s8, 4  ;;  %s708_s9 = int_to_ptr.vmem [resolvable:$false] %s707_s9 }
  0x14   : > { %v695_v0 = vld [vmem:[%s942_s1 + $0x8] sm:$0xff]   ;;  %v781_v1 = vmov 0.0   ;;  %v696_v2 = vld [vmem:[%s942_s1] sm:$0xff]   ;;  %vm782_vm0 = vmmov 0   ;;  %vm290_vm1 = vcmask 261120   ;;  %s269_s11 = scalar_select %p268_p11, %s771_s21, 1 }
  0x15   : > { %618 = vmatprep.subr.bf16.mxu0 %v781_v1  ;;  %626 = vmatprep.subr.bf16.mxu1 %v781_v1  ;;  %291 = vst.msk [vmem:[#allocation2] sm:$0xff] %vm290_vm1, %v781_v1  ;;  %v697_v5 = vld [vmem:[%s944_s3 + $0x18] sm:$0xff]   ;;  %v698_v6 = vld [vmem:[%s944_s3 + $0x10] sm:$0xff]   ;;  %v699_v7 = vld [vmem:[%s944_s3 + $0x8] sm:$0xff]   ;;  %vm404_vm2 = vcmask 523264  }
  0x16   : > { %619 = vmatpush3.bf16.msra.mxu0 %v695_v0  ;;  %622 = vmatprep.mubr.msk.bf16.mxu0 %vm782_vm0, %v781_v1  ;;  %s595_s12 = sshll.u32 %s269_s11, 3  ;;  %v700_v8 = vld [vmem:[%s944_s3] sm:$0xff]   ;;  %s265_s11 = sand.u32 1, %s763_s19  }
  0x17   : > { %620 = vmatprep.subr.bf16.mxu0 %v781_v1  ;;  %634 = vmatprep.mubr.msk.bf16.mxu1 %vm782_vm0, %v781_v1  ;;  %s271_s15 = scalar_lea.vmem %s941_s0, %s595_s12  ;;  %v596_v9 = vld [vmem:[%s943_s2] ss:$0 sm:$0xff]  ;;  %s594_s12 = sshll.u32 %s265_s11, 3 }
  0x18   : > { %v292_v3 = vld [vmem:[%s271_s15] sm:$0xff]  ;;  %627 = vmatpush3.bf16.msra.mxu1 %v697_v5  ;;  %s607_s15 = sshll.u32 %s771_s21, 7  ;;  %s267_s16 = scalar_lea.vmem [#allocation3], %s594_s12 }
  0x19   : > { %v293_v4 = vpack.c.bf16 %v292_v3, %v292_v3  ;;  %628 = vmatprep.subr.bf16.mxu1 %v781_v1  ;;  %v605_v31 = vld [vmem:[%s945_s4] ss:$0 sm:$0xff]  ;;  %s477_s17 = sshll.u32 %s267_s16, 4  ;;  %s475_s27 = scalar_lea.hbm %s946_s5, %s607_s15  ;;  %s478_s17 = int_to_ptr.vmem [resolvable:$true] %s477_s17 }
  0x1a   : > { %621 = vmatpush3.bf16.msra.mxu0 %v696_v2  ;;  %s464_s29 = scalar_lea.sflag [#allocation4], %s265_s11  ;;  %s703_s7 = scalar_lea.vmem %s478_s17, 128 }
  0x1b   : > { %p704_p12 = scmp.ne.s32.totalorder %s478_s17, %s703_s7  ;;  %s709_s21 = scalar_lea.vmem %s708_s9, 256 }
  0x1c   : > { %629 = vmatpush3.bf16.msra.mxu1 %v698_v6  ;;  %v370_v25 = vld [vmem:[#allocation2] sm:$0xff]  ;;  %p710_p1 = scmp.lt.s32.totalorder %s478_s17, %s708_s9  ;;  %p711_p2 = scmp.lt.s32.totalorder %s709_s21, %s703_s7 }
  0x1d   : > { %623 = vmatmul.mubr.msk.bf16.vlgmr.msra.gmra.mxu0 %vm290_vm1, %v293_v4  ;;  %630 = vmatprep.subr.bf16.mxu1 %v781_v1  ;;  %p705_p13 = pnand %p704_p12, %p854_p4 }
  0x1e   : > { %p712_p3 = por %p711_p2, %p710_p1 }
  0x1f   : > { %p706_p0 = pneg %p705_p13 }
  0x20   : > { %631 = vmatpush3.bf16.msra.mxu1 %v699_v7 }
  0x21   : > { %632 = vmatprep.subr.bf16.mxu1 %v781_v1  ;;  %p713_p5 = pnand %p712_p3, %p706_p0 }
  0x24   : > { %633 = vmatpush3.bf16.msra.mxu1 %v700_v8 }
  0xdd   : > { %v355_v10 = vpop.f32.mrf.mxu0 }
  0xde   : > { %v356_v11 = vadd.f32 %v596_v9, %v355_v10 }
  0xdf   : > { %v624_v12 = vpop.f32.mrf.mxu0 }
  0xe0   : > { %v362_v13 = vmul.f32 %v356_v11, %v356_v11  ;;  %v361_v21 = vmul.f32 0.5, %v356_v11 }
  0xe1   : > { %v358_v14 = vpop.f32.mrf.mxu0 }
  0xe2   : > { %v363_v15 = vmul.f32 %v362_v13, %v356_v11 }
  0xe3   : > { %v625_v16 = vpop.f32.mrf.mxu0 }
  0xe4   : > { %v364_v17 = vmul.f32 0.044715, %v363_v15 }
  0xe6   : > { %v365_v18 = vadd.f32 %v364_v17, %v356_v11 }
  0xe8   : > { %v366_v19 = vmul.f32 0.7978846, %v365_v18 }
  0xea   : > { %701 = vtanh.f32 %v366_v19 }
  0xf7   : > { %v702_v20 = vpop.eup %701 }
  0xf8   : > { %v368_v22 = vadd.f32 1.0, %v702_v20 }
  0xfa   : > { %v369_v23 = vmul.f32 %v368_v22, %v361_v21 }
  0xfc   : > { %v371_v24 = vpack.c.bf16 %v369_v23, %v369_v23 }
  0xfe   : > { %635 = vmatmul.mubr.msk.bf16.vlgmr.msra.gmra.mxu1 %vm404_vm2, %v371_v24 }
 0x1be   : > { %v442_v26 = vpop.f32.mrf.mxu1 }
 0x1bf   : > { %v448_v27 = vadd.f32 %v442_v26, %v370_v25 }
 0x1c0   : > { %v636_v28 = vpop.f32.mrf.mxu1 }
 0x1c1   : > { %449 = vst.msk [vmem:[#allocation2] sm:$0xff] %vm290_vm1, %v448_v27 }
 0x1c2   : > { %v445_v29 = vpop.f32.mrf.mxu1 }
 0x1c4   : > { %v637_v30 = vpop.f32.mrf.mxu1 }
 0x1c8   : > { %v453_v32 = vld [vmem:[#allocation2] sm:$0xff] }
 0x1c9   : > { %v461_v33 = vadd.f32 %v605_v31, %v453_v32 }
 0x1cb   : > { %462 = vst.msk [vmem:[%s267_s16] sm:$0xff] %vm290_vm1, %v461_v33 }
 0x1cc   : > { %716 = shalt.err (!%p713_p5)
}
 0x1cd   : > { %s717_s10 = scalar_lea.hbm %s475_s27, 128  ;;  %s721_s13 = scalar_lea.hbm %s946_s5, 256 }
 0x1ce   : > { %p718_p6 = scmp.ne.s32.totalorder %s475_s27, %s717_s10  ;;  %p722_p10 = scmp.lt.s32.totalorder %s475_s27, %s946_s5 }
 0x1cf   : > { %p723_p11 = scmp.lt.s32.totalorder %s721_s13, %s717_s10 }
 0x1d0   : > { %p719_p7 = pnand %p718_p6, %p854_p4 }
 0x1d1   : > { %p724_p12 = por %p723_p11, %p722_p10 }
 0x1d2   : > { %p720_p9 = pneg %p719_p7 }
 0x1d4   : > { %p725_p13 = pnand %p724_p12, %p720_p9 }
 0x1d6   : > { %728 = shalt.err (!%p725_p13)
}
 0x1d7   : > { %638 = dma.vmem_to_hbm [thread:$0]  (%p854_p4), %s478_s17, 128, %s475_s27, %s464_s29  }
 0x1d8 PF: > { %p644_p0 = scmp.ge.s32.totalorder %s779_s23, 2  ;;  %s489_s16 = sand.u32 1, %s759_s18  }
 0x1d9   : > { %s490_s24 = scalar_lea.sflag [#allocation4], %s489_s16 }
 0x1da   : > { %p641_p1 = pnand %p644_p0, %p861_p8 }
 0x1dc   : > { %p642_p2 = pneg %p641_p1 }
 0x1de   : > { %754 = dma.done.wait (%p642_p2), %s490_s24, 128  }
 0x1df   : > { %756 = vsyncadd (%p642_p2), %s490_s24, 4294967168  ;;  %s18_s23 = sadd.s32 1, %s779_s23   ;;  %s949_s18 = smov %s763_s19 }
 0x1e0   : > { %p15_p3 = scmp.ge.s32.totalorder %s18_s23, 4   ;;  %s950_s19 = smov %s767_s20 }
 0x1e1   : > { %s951_s20 = smov %s867_s6  ;;  %s952_s21 = smov %s775_s22 }
 0x1e2   : > { %s953_s22 = smov %s955_s26  ;;  %17 = sbr.rel (!%p15_p3) target bundleno = 4 (0x4), region = 92 }
 0x1e7   :  { %495 = vsyncpa [#allocation4], 1 }
 0x1e8   :  { %497 = vsyncpa [#allocation4 + $0x1], 1 }

// kernel: tpu_custom_call.1
= control target key start
LH: loop header
LB: loop body
LE: loop exit
PB: predicated region body
PF: predicated region fallthrough
CT: control target
= control target key end

     0   :  { %10 = vsyncpa [#allocation4], 0  ;;  %s941_s0 = inlined_call_operand.vmem [shape: f32[16,32], index: 0, kind: input, shape index: {}]   ;;  %s942_s1 = inlined_call_operand.vmem [shape: bf16[32,64], index: 1, kind: input, shape index: {}]   ;;  %s943_s2 = inlined_call_operand.vmem [shape: f32[1,64], index: 2, kind: input, shape index: {}]   ;;  %s944_s3 = inlined_call_operand.vmem [shape: bf16[64,32], index: 3, kind: input, shape index: {}]   ;;  %s945_s4 = inlined_call_operand.vmem [shape: f32[1,32], index: 4, kind: input, shape index: {}]   ;;  %s946_s5 = inlined_call_operand.hbm [shape: f32[16,32], index: 5, kind: output, shape index: {}]  }
   0x1   :  { %12 = vsyncpa [#allocation4 + $0x1], 0  ;;  %s814_s18 = smov 0   ;;  %s816_s19 = smov 0  }
   0x2   :  { %s818_s20 = smov 0   ;;  %s820_s21 = smov 0  }
   0x3   :  { %s822_s22 = smov 0   ;;  %s824_s23 = smov 0  }
   0x4 LB: > { %s586_s24 = sadd.s32 4294967295, %s779_s23   ;;  %s587_s25 = sadd.s32 4294967294, %s779_s23   ;;  %s779_s23 = sphi %s824_s23, %s18_s23   ;;  %s775_s22 = sphi %s822_s22, %s953_s22   ;;  %s771_s21 = sphi %s820_s21, %s952_s21   ;;  %s767_s20 = sphi %s818_s20, %s951_s20   ;;  %s763_s19 = sphi %s816_s19, %s950_s19   ;;  %s759_s18 = sphi %s814_s18, %s949_s18  }
   0x5   : > { %s30_s26 = sadd.s32 1, %s775_s22  ;;  %s162_s27 = sadd.s32 1, %s767_s20 }
   0x6   : > { %p32_p0 = scmp.ge.s32.totalorder %s30_s26, 2  ;;  %p172_p1 = scmp.ne.s32.totalorder %s767_s20, %s763_s19 }
   0x7   : > { %p173_p2 = scmp.eq.s32.totalorder %s586_s24, 1  ;;  %p178_p3 = scmp.ne.s32.totalorder %s763_s19, %s759_s18 }
   0x8   : > { %s955_s26 = smov (%p32_p0, %s30_s26), 0  ;;  %p179_p5 = scmp.eq.s32.totalorder %s587_s25, 1 }
   0x9   : > { %p854_p4 = por %p173_p2, %p172_p1  ;;  %s159_s29 = ssub.s32 %s775_s22, %s955_s26 }
   0xa   : > { %p593_p6 = scmp.ge.s32.totalorder %s779_s23, 1  ;;  %p160_p7 = scmp.eq.s32.totalorder %s159_s29, 0 }
   0xb   : > { %p861_p8 = por %p179_p5, %p178_p3  ;;  %p229_p9 = scmp.lt.s32.totalorder %s779_s23, 3 }
   0xc   : > { %s867_s6 = scalar_select %p160_p7, %s767_s20, %s162_s27  }
   0xd   : > { %p230_p10 = pnand %p593_p6, %p229_p9 }
   0xe   : > { %p268_p11 = scmp.lt.s32.totalorder (!%p230_p10), %s771_s21, 1  ;;  %s783_s8 = smov (!%p230_p10), [#allocation3]  }
   0xf   : > { %233 = sbr.rel (%p230_p10) target bundleno = 472 (0x1d8), region = 40  ;;  %s707_s9 = sshll.u32 (!%p230_p10), %s783_s8, 4  ;;  %s708_s9 = int_to_ptr.vmem [resolvable:$false] %s707_s9 }
  0x14   : > { %v695_v0 = vld [vmem:[%s942_s1 + $0x8] sm:$0xff]   ;;  %v781_v1 = vmov 0.0   ;;  %v696_v2 = vld [vmem:[%s942_s1] sm:$0xff]   ;;  %vm782_vm0 = vmmov 0   ;;  %vm290_vm1 = vcmask 261120   ;;  %s269_s11 = scalar_select %p268_p11, %s771_s21, 1 }
  0x15   : > { %618 = vmatprep.subr.bf16.mxu0 %v781_v1  ;;  %626 = vmatprep.subr.bf16.mxu1 %v781_v1  ;;  %291 = vst.msk [vmem:[#allocation2] sm:$0xff] %vm290_vm1, %v781_v1  ;;  %v697_v5 = vld [vmem:[%s944_s3 + $0x18] sm:$0xff]   ;;  %v698_v6 = vld [vmem:[%s944_s3 + $0x10] sm:$0xff]   ;;  %v699_v7 = vld [vmem:[%s944_s3 + $0x8] sm:$0xff]   ;;  %vm404_vm2 = vcmask 523264  }
  0x16   : > { %619 = vmatpush3.bf16.msra.mxu0 %v695_v0  ;;  %622 = vmatprep.mubr.msk.bf16.mxu0 %vm782_vm0, %v781_v1  ;;  %s595_s12 = sshll.u32 %s269_s11, 3  ;;  %v700_v8 = vld [vmem:[%s944_s3] sm:$0xff]   ;;  %s265_s11 = sand.u32 1, %s763_s19  }
  0x17   : > { %620 = vmatprep.subr.bf16.mxu0 %v781_v1  ;;  %634 = vmatprep.mubr.msk.bf16.mxu1 %vm782_vm0, %v781_v1  ;;  %s271_s15 = scalar_lea.vmem %s941_s0, %s595_s12  ;;  %v596_v9 = vld [vmem:[%s943_s2] ss:$0 sm:$0xff]  ;;  %s594_s12 = sshll.u32 %s265_s11, 3 }
  0x18   : > { %v292_v3 = vld [vmem:[%s271_s15] sm:$0xff]  ;;  %627 = vmatpush3.bf16.msra.mxu1 %v697_v5  ;;  %s607_s15 = sshll.u32 %s771_s21, 7  ;;  %s267_s16 = scalar_lea.vmem [#allocation3], %s594_s12 }
  0x19   : > { %v293_v4 = vpack.c.bf16 %v292_v3, %v292_v3  ;;  %628 = vmatprep.subr.bf16.mxu1 %v781_v1  ;;  %v605_v31 = vld [vmem:[%s945_s4] ss:$0 sm:$0xff]  ;;  %s477_s17 = sshll.u32 %s267_s16, 4  ;;  %s475_s27 = scalar_lea.hbm %s946_s5, %s607_s15  ;;  %s478_s17 = int_to_ptr.vmem [resolvable:$true] %s477_s17 }
  0x1a   : > { %621 = vmatpush3.bf16.msra.mxu0 %v696_v2  ;;  %s464_s29 = scalar_lea.sflag [#allocation4], %s265_s11  ;;  %s703_s7 = scalar_lea.vmem %s478_s17, 128 }
  0x1b   : > { %p704_p12 = scmp.ne.s32.totalorder %s478_s17, %s703_s7  ;;  %s709_s21 = scalar_lea.vmem %s708_s9, 256 }
  0x1c   : > { %629 = vmatpush3.bf16.msra.mxu1 %v698_v6  ;;  %v370_v25 = vld [vmem:[#allocation2] sm:$0xff]  ;;  %p710_p1 = scmp.lt.s32.totalorder %s478_s17, %s708_s9  ;;  %p711_p2 = scmp.lt.s32.totalorder %s709_s21, %s703_s7 }
  0x1d   : > { %623 = vmatmul.mubr.msk.bf16.vlgmr.msra.gmra.mxu0 %vm290_vm1, %v293_v4  ;;  %630 = vmatprep.subr.bf16.mxu1 %v781_v1  ;;  %p705_p13 = pnand %p704_p12, %p854_p4 }
  0x1e   : > { %p712_p3 = por %p711_p2, %p710_p1 }
  0x1f   : > { %p706_p0 = pneg %p705_p13 }
  0x20   : > { %631 = vmatpush3.bf16.msra.mxu1 %v699_v7 }
  0x21   : > { %632 = vmatprep.subr.bf16.mxu1 %v781_v1  ;;  %p713_p5 = pnand %p712_p3, %p706_p0 }
  0x24   : > { %633 = vmatpush3.bf16.msra.mxu1 %v700_v8 }
  0xdd   : > { %v355_v10 = vpop.f32.mrf.mxu0 }
  0xde   : > { %v356_v11 = vadd.f32 %v596_v9, %v355_v10 }
  0xdf   : > { %v624_v12 = vpop.f32.mrf.mxu0 }
  0xe0   : > { %v362_v13 = vmul.f32 %v356_v11, %v356_v11  ;;  %v361_v21 = vmul.f32 0.5, %v356_v11 }
  0xe1   : > { %v358_v14 = vpop.f32.mrf.mxu0 }
  0xe2   : > { %v363_v15 = vmul.f32 %v362_v13, %v356_v11 }
  0xe3   : > { %v625_v16 = vpop.f32.mrf.mxu0 }
  0xe4   : > { %v364_v17 = vmul.f32 0.044715, %v363_v15 }
  0xe6   : > { %v365_v18 = vadd.f32 %v364_v17, %v356_v11 }
  0xe8   : > { %v366_v19 = vmul.f32 0.7978846, %v365_v18 }
  0xea   : > { %701 = vtanh.f32 %v366_v19 }
  0xf7   : > { %v702_v20 = vpop.eup %701 }
  0xf8   : > { %v368_v22 = vadd.f32 1.0, %v702_v20 }
  0xfa   : > { %v369_v23 = vmul.f32 %v368_v22, %v361_v21 }
  0xfc   : > { %v371_v24 = vpack.c.bf16 %v369_v23, %v369_v23 }
  0xfe   : > { %635 = vmatmul.mubr.msk.bf16.vlgmr.msra.gmra.mxu1 %vm404_vm2, %v371_v24 }
 0x1be   : > { %v442_v26 = vpop.f32.mrf.mxu1 }
 0x1bf   : > { %v448_v27 = vadd.f32 %v442_v26, %v370_v25 }
 0x1c0   : > { %v636_v28 = vpop.f32.mrf.mxu1 }
 0x1c1   : > { %449 = vst.msk [vmem:[#allocation2] sm:$0xff] %vm290_vm1, %v448_v27 }
 0x1c2   : > { %v445_v29 = vpop.f32.mrf.mxu1 }
 0x1c4   : > { %v637_v30 = vpop.f32.mrf.mxu1 }
 0x1c8   : > { %v453_v32 = vld [vmem:[#allocation2] sm:$0xff] }
 0x1c9   : > { %v461_v33 = vadd.f32 %v605_v31, %v453_v32 }
 0x1cb   : > { %462 = vst.msk [vmem:[%s267_s16] sm:$0xff] %vm290_vm1, %v461_v33 }
 0x1cc   : > { %716 = shalt.err (!%p713_p5)
}
 0x1cd   : > { %s717_s10 = scalar_lea.hbm %s475_s27, 128  ;;  %s721_s13 = scalar_lea.hbm %s946_s5, 256 }
 0x1ce   : > { %p718_p6 = scmp.ne.s32.totalorder %s475_s27, %s717_s10  ;;  %p722_p10 = scmp.lt.s32.totalorder %s475_s27, %s946_s5 }
 0x1cf   : > { %p723_p11 = scmp.lt.s32.totalorder %s721_s13, %s717_s10 }
 0x1d0   : > { %p719_p7 = pnand %p718_p6, %p854_p4 }
 0x1d1   : > { %p724_p12 = por %p723_p11, %p722_p10 }
 0x1d2   : > { %p720_p9 = pneg %p719_p7 }
 0x1d4   : > { %p725_p13 = pnand %p724_p12, %p720_p9 }
 0x1d6   : > { %728 = shalt.err (!%p725_p13)
}
 0x1d7   : > { %638 = dma.vmem_to_hbm [thread:$0]  (%p854_p4), %s478_s17, 128, %s475_s27, %s464_s29  }
 0x1d8 PF: > { %p644_p0 = scmp.ge.s32.totalorder %s779_s23, 2  ;;  %s489_s16 = sand.u32 1, %s759_s18  }
 0x1d9   : > { %s490_s24 = scalar_lea.sflag [#allocation4], %s489_s16 }
 0x1da   : > { %p641_p1 = pnand %p644_p0, %p861_p8 }
 0x1dc   : > { %p642_p2 = pneg %p641_p1 }
 0x1de   : > { %754 = dma.done.wait (%p642_p2), %s490_s24, 128  }
 0x1df   : > { %756 = vsyncadd (%p642_p2), %s490_s24, 4294967168  ;;  %s18_s23 = sadd.s32 1, %s779_s23   ;;  %s949_s18 = smov %s763_s19 }
 0x1e0   : > { %p15_p3 = scmp.ge.s32.totalorder %s18_s23, 4   ;;  %s950_s19 = smov %s767_s20 }
 0x1e1   : > { %s951_s20 = smov %s867_s6  ;;  %s952_s21 = smov %s775_s22 }
 0x1e2   : > { %s953_s22 = smov %s955_s26  ;;  %17 = sbr.rel (!%p15_p3) target bundleno = 4 (0x4), region = 92 }
 0x1e7   :  { %495 = vsyncpa [#allocation4], 1 }
 0x1e8   :  { %497 = vsyncpa [#allocation4 + $0x1], 1 }

</bundles_post_ra>
